<compile_context>
chip_gen: v7x
topology: tpu7x:2x2x1
jax: 0.10.0
libtpu: 0.0.40
codegen_flags: <defaults>
</compile_context>

<pallas_src>
import functools

import jax
import jax.numpy as jnp
from jax.experimental import pallas as pl
from jax.experimental.pallas import tpu as pltpu

_INT32_MIN = -(2 ** 31)


def _accuracy_tile_kernel(preds_ref, targets_ref, counts_ref, *,
                          batch_size, use_packed_key):
    """One batch tile: counts correct rows and writes the count to its block."""
    i = pl.program_id(0)
    preds = preds_ref[...]                                    # (TB, C) native dtype
    targets = targets_ref[...]                                # (TB, 1) int32
    tb, c = preds.shape
    col = jax.lax.broadcasted_iota(jnp.int32, (tb, c), 1)     # (TB, C)

    if use_packed_key:
        # Single-pass packed-key argmax (bf16 only).  bf16 -> f32 pads the
        # mantissa with 16 zero bits, so the low 16 bits of the monotone
        # bit-mapped value are free to carry the first-index tie-break.
        bits = pltpu.bitcast(preds.astype(jnp.float32), jnp.int32)
        mapped = jnp.where(bits >= 0, bits, jnp.int32(_INT32_MIN) - bits)
        key = mapped | (jnp.int32(c - 1) - col)               # int32 compares only
        best = jnp.max(key, axis=-1, keepdims=True)           # ONE XLU reduction
        pred_idx = jnp.int32(c - 1) - (best & jnp.int32(0xFFFF))
    else:
        # Exact two-pass argmax with first-index tie-breaking (matches torch).
        max_v = jnp.max(preds, axis=-1, keepdims=True)        # (TB, 1)
        cand = jnp.where(preds == max_v, col, jnp.int32(c))   # (TB, C)
        pred_idx = jnp.min(cand, axis=-1, keepdims=True)      # (TB, 1)

    # Mask rows past the true batch size (partial last tile).
    row = jax.lax.broadcasted_iota(jnp.int32, (tb, 1), 0) + i * tb
    hit = jnp.logical_and(pred_idx == targets, row < batch_size)

    count = jnp.sum(hit.astype(jnp.int32))                    # per-tile correct
    counts_ref[...] = jnp.full(counts_ref.shape, count, dtype=jnp.int32)


def _round_up(x, m):
    return ((x + m - 1) // m) * m


def _sublane_multiple(dtype):
    # f32 -> 8 packed sublanes, bf16 -> 16, int8/fp8 -> 32.
    return max(8, 32 // jnp.dtype(dtype).itemsize)


def _vmem_ceiling_bytes():
    """Per-generation VMEM ceiling: ~65% of physical, capped at 100 MiB."""
    phys = 64 * 1024 * 1024                       # conservative default (v7x/TC)
    try:
        info = pltpu.get_tpu_info()
        phys = int(getattr(info, "vmem_capacity_bytes", phys))
    except Exception:
        pass
    return min(int(phys * 0.65), 100 * 1024 * 1024)


def _choose_batch_tile(batch, n_classes, dtype, vmem_ceiling):
    """Largest sublane-aligned row tile whose PADDED double-buffered footprint
    (preds lane-padded to 128 + lane-padded (tb,1) int32 targets) fits."""
    sub = _sublane_multiple(dtype)
    itemsize = jnp.dtype(dtype).itemsize
    preds_row = _round_up(n_classes, 128) * itemsize          # VMEM bytes / row
    tgt_row = 128 * 4                                         # (tb,1) i32, lane-padded
    per_row = 2 * (preds_row + tgt_row)                       # double-buffered
    budget = max(per_row * sub, vmem_ceiling - (1 << 20))     # counts/slack headroom
    tb = max(sub, budget // per_row)
    tb = max(sub, (tb // sub) * sub)
    tb = min(tb, 32768)                                       # diminishing returns
    tb = min(tb, max(sub, _round_up(batch, sub)))
    return int(tb)


@functools.partial(jax.jit, static_argnames=("batch_tile",))
def accuracy_forward(preds, targets, correct, total, *, batch_tile=None):
    """One metric step.

    Returns (m, acc, new_correct, new_total):
      m   = number of correct predictions in this batch (float32)
      acc = m / batch_size
    """
    batch, n_classes = preds.shape
    itemsize = jnp.dtype(preds.dtype).itemsize
    targets2d = targets.reshape(batch, 1).astype(jnp.int32)

    vmem_ceiling = _vmem_ceiling_bytes()
    tb = batch_tile if batch_tile is not None else _choose_batch_tile(
        batch, n_classes, preds.dtype, vmem_ceiling)
    num_tiles = pl.cdiv(batch, tb)

    use_packed = (preds.dtype == jnp.bfloat16) and (n_classes <= 65536)
    kernel = functools.partial(_accuracy_tile_kernel, batch_size=batch,
                               use_packed_key=use_packed)

    counts = pl.pallas_call(
        kernel,
        grid=(num_tiles,),
        in_specs=[
            pl.BlockSpec((tb, n_classes), lambda i: (i, 0),
                         memory_space=pltpu.VMEM),             # preds tile
            pl.BlockSpec((tb, 1), lambda i: (i, 0),
                         memory_space=pltpu.VMEM),             # targets tile
        ],
        # One disjoint (8,128) int32 block per grid step -> safe under
        # "parallel" (v7x megacore) and fully (8,128)-aligned.
        out_specs=pl.BlockSpec((8, 128), lambda i: (i, 0),
                               memory_space=pltpu.VMEM),
        out_shape=jax.ShapeDtypeStruct((num_tiles * 8, 128), jnp.int32),
        compiler_params=pltpu.CompilerParams(
            dimension_semantics=("parallel",),
            vmem_limit_bytes=vmem_ceiling),
        cost_estimate=pl.CostEstimate(
            flops=3 * batch * n_classes,
            transcendentals=0,
            bytes_accessed=batch * n_classes * itemsize + batch * 4
                           + num_tiles * 8 * 128 * 4),
    )(preds, targets2d)

    m = jnp.sum(counts.reshape(num_tiles, 8, 128)[:, 0, 0]).astype(jnp.float32)
    n = jnp.float32(batch)
    acc = m / n
    return m, acc, correct + m, total + n


class Accuracy:
    """JAX/Pallas port of the PyTorch Accuracy module."""

    def __init__(self):
        # nn.Parameter(torch.tensor(0.0), requires_grad=False) equivalents:
        self.correct = jnp.float32(0.0)
        self.total = jnp.float32(0.0)

    def __call__(self, preds, targets):
        _m, acc, self.correct, self.total = accuracy_forward(
            preds, targets, self.correct, self.total)
        return acc

    def compute(self):
        return self.correct / self.total

    def reset(self):
        self.correct = jnp.float32(0.0)
        self.total = jnp.float32(0.0)


if __name__ == "__main__":
    key = jax.random.PRNGKey(0)
    k_preds, k_targets = jax.random.split(key)

    B, C = 32, 32  # batch=32 samples, 32 classes
    preds_f32 = jax.random.normal(k_preds, (B, C), dtype=jnp.float32)
    preds_bf16 = preds_f32.astype(jnp.bfloat16)   # native bf16 into the kernel
    targets = jax.random.randint(k_targets, (B,), 0, C, dtype=jnp.int32)

    # --- bf16 path (single-pass packed-key argmax) -------------------------
    ref_m_bf = jnp.sum(jnp.argmax(preds_bf16, axis=-1).astype(jnp.int32) == targets)
    ref_acc_bf = ref_m_bf.astype(jnp.float32) / jnp.float32(B)

    metric = Accuracy()
    acc = jax.block_until_ready(metric(preds_bf16, targets))
    assert jnp.allclose(acc, ref_acc_bf), (acc, ref_acc_bf)
    assert jnp.allclose(metric.compute(), ref_acc_bf), (metric.compute(), ref_acc_bf)
    assert jnp.allclose(metric.total, jnp.float32(B)), metric.total

    # Second step exercises the running correct/total update.
    acc2 = jax.block_until_ready(metric(preds_bf16, targets))
    assert jnp.allclose(acc2, ref_acc_bf), (acc2, ref_acc_bf)
    assert jnp.allclose(metric.compute(), ref_acc_bf), (metric.compute(), ref_acc_bf)
    assert jnp.allclose(metric.total, jnp.float32(2 * B)), metric.total

    # --- f32 path (two-pass argmax), forced multi-tile grid ----------------
    ref_m_f32 = jnp.sum(jnp.argmax(preds_f32, axis=-1).astype(jnp.int32) == targets)
    ref_acc_f32 = ref_m_f32.astype(jnp.float32) / jnp.float32(B)
    m3, acc3, c3, t3 = accuracy_forward(
        preds_f32, targets, jnp.float32(0.0), jnp.float32(0.0), batch_tile=16)
    acc3 = jax.block_until_ready(acc3)
    assert int(m3) == int(ref_m_f32), (m3, ref_m_f32)
    assert jnp.allclose(acc3, ref_acc_f32), (acc3, ref_acc_f32)
    assert jnp.allclose(c3, ref_m_f32.astype(jnp.float32)) and jnp.allclose(
        t3, jnp.float32(B))

    # --- bf16 multi-tile (packed path across several "parallel" steps) -----
    m4, acc4, _, _ = accuracy_forward(
        preds_bf16, targets, jnp.float32(0.0), jnp.float32(0.0), batch_tile=16)
    jax.block_until_ready(acc4)
    assert int(m4) == int(ref_m_bf), (m4, ref_m_bf)

    print("KERNEL_OK")
</pallas_src>

<mosaic_0001>
module attributes {stable_mosaic.version = 11 : i64} {
  func.func @_accuracy_tile_kernel(%arg0: i32, %arg1: memref<32x32xbf16, #tpu.memory_space<vmem>>, %arg2: memref<32x1xi32, #tpu.memory_space<vmem>>, %arg3: memref<8x128xi32, #tpu.memory_space<vmem>>) attributes {dimension_semantics = [#tpu.dimension_semantics<parallel>], iteration_bounds = array<i64: 1>, scalar_prefetch = 0 : i64, scratch_operands = 0 : i64, tpu.core_type = #tpu.core_type<tc>, window_params = [{transform_indices = @transform_0, window_bounds = array<i64: 32, 32>}, {transform_indices = @transform_1, window_bounds = array<i64: 32, 1>}, {transform_indices = @transform_2, window_bounds = array<i64: 8, 128>}]} {
    %c0 = arith.constant 0 : index
    %c0_0 = arith.constant 0 : index
    %0 = vector.load %arg1[%c0, %c0_0] : memref<32x32xbf16, #tpu.memory_space<vmem>>, vector<32x32xbf16>
    %c0_1 = arith.constant 0 : index
    %c0_2 = arith.constant 0 : index
    %1 = vector.load %arg2[%c0_1, %c0_2] : memref<32x1xi32, #tpu.memory_space<vmem>>, vector<32x1xi32>
    %2 = tpu.iota {dimensions = array<i32: 1>} : vector<32x32xi32>
    %3 = arith.extf %0 : vector<32x32xbf16> to vector<32x32xf32>
    %4 = tpu.bitcast %3 : vector<32x32xf32> -> vector<32x32xi32>
    %c0_i32 = arith.constant 0 : i32
    %5 = vector.broadcast %c0_i32 : i32 to vector<32x32xi32>
    %6 = arith.cmpi sge, %4, %5 : vector<32x32xi32>
    %c-2147483648_i32 = arith.constant -2147483648 : i32
    %7 = vector.broadcast %c-2147483648_i32 : i32 to vector<32x32xi32>
    %8 = arith.subi %7, %4 : vector<32x32xi32>
    %9 = arith.select %6, %4, %8 : vector<32x32xi1>, vector<32x32xi32>
    %c31_i32 = arith.constant 31 : i32
    %10 = vector.broadcast %c31_i32 : i32 to vector<32x32xi32>
    %11 = arith.subi %10, %2 : vector<32x32xi32>
    %12 = arith.ori %9, %11 : vector<32x32xi32>
    %cst = arith.constant dense<-2147483648> : vector<32xi32>
    %13 = vector.multi_reduction <maxsi>, %12, %cst [1] : vector<32x32xi32> to vector<32xi32>
    %14 = vector.shape_cast %13 : vector<32xi32> to vector<32x1xi32>
    %c65535_i32 = arith.constant 65535 : i32
    %15 = vector.broadcast %c65535_i32 : i32 to vector<32x1xi32>
    %16 = arith.andi %14, %15 : vector<32x1xi32>
    %c31_i32_3 = arith.constant 31 : i32
    %17 = vector.broadcast %c31_i32_3 : i32 to vector<32x1xi32>
    %18 = arith.subi %17, %16 : vector<32x1xi32>
    %19 = tpu.iota {dimensions = array<i32: 0>} : vector<32x1xi32>
    %c32_i32 = arith.constant 32 : i32
    %20 = arith.muli %arg0, %c32_i32 : i32
    %21 = vector.broadcast %20 : i32 to vector<32x1xi32>
    %22 = arith.addi %19, %21 : vector<32x1xi32>
    %23 = arith.cmpi eq, %18, %1 : vector<32x1xi32>
    %c32_i32_4 = arith.constant 32 : i32
    %24 = vector.broadcast %c32_i32_4 : i32 to vector<32x1xi32>
    %25 = arith.cmpi slt, %22, %24 : vector<32x1xi32>
    %26 = arith.andi %23, %25 : vector<32x1xi1>
    %27 = arith.extui %26 : vector<32x1xi1> to vector<32x1xi32>
    %28 = vector.shape_cast %27 : vector<32x1xi32> to vector<1x32x1xi32>
    %cst_5 = arith.constant dense<0> : vector<1xi32>
    %29 = vector.multi_reduction <add>, %28, %cst_5 [1, 2] : vector<1x32x1xi32> to vector<1xi32>
    %30 = vector.shape_cast %29 : vector<1xi32> to vector<1x1x1xi32>
    %31 = vector.extract %30[0, 0, 0] : i32 from vector<1x1x1xi32>
    %32 = vector.broadcast %31 : i32 to vector<8x128xi32>
    %c0_6 = arith.constant 0 : index
    %c0_7 = arith.constant 0 : index
    %33 = vector.load %arg3[%c0_6, %c0_7] : memref<8x128xi32, #tpu.memory_space<vmem>>, vector<8x128xi32>
    tpu.vector_store %arg3[%c0_6, %c0_7], %32 {strides = array<i32>} : memref<8x128xi32, #tpu.memory_space<vmem>>, vector<8x128xi32>,
    return
  }
  func.func @transform_0(%arg0: i32) -> (i32, i32) {
    %c0_i32 = arith.constant 0 : i32
    %c0_i32_0 = arith.constant 0 : i32
    return %arg0, %c0_i32 : i32, i32
  }
  func.func @transform_1(%arg0: i32) -> (i32, i32) {
    %c0_i32 = arith.constant 0 : i32
    %c0_i32_0 = arith.constant 0 : i32
    return %arg0, %c0_i32 : i32, i32
  }
  func.func @transform_2(%arg0: i32) -> (i32, i32) {
    %c0_i32 = arith.constant 0 : i32
    %c0_i32_0 = arith.constant 0 : i32
    return %arg0, %c0_i32 : i32, i32
  }
}

</mosaic_0001>

<bundles_post_ra>
// kernel: accuracy_forward.1
= control target key start
LH: loop header
LB: loop body
LE: loop exit
PB: predicated region body
PF: predicated region fallthrough
CT: control target
= control target key end

     0   :  { %v19_v0 = vlaneseq  ;;  %vm46_vm4 = vcmask 261120   ;;  %vm142_vm12 = vcmask 7168   ;;  %s224_s0 = inlined_call_operand.vmem [shape: bf16[32,32], index: 0, kind: input, shape index: {}]   ;;  %s225_s1 = inlined_call_operand.vmem [shape: s32[32,1], index: 1, kind: input, shape index: {}]   ;;  %s226_s2 = inlined_call_operand.vmem [shape: s32[8,128], index: 2, kind: output, shape index: {}]  }
   0x1   :  { %v176_v1 = vld [vmem:[%s224_s0] sm:$0xff]   ;;  %v183_v2 = vld [vmem:[%s224_s0 + $0x8] sm:$0xff]  }
   0x2   :  { %v177_v3 = vunpack.c.l.bf16 %v176_v1  ;;  %v20_v4 = vand.u32 127, %v19_v0  ;;  %v181_v5 = vunpack.c.l.bf16 %v183_v2  ;;  %v178_v6 = vunpack.c.h.bf16 %v176_v1 }
   0x3   :  { %v182_v7 = vunpack.c.h.bf16 %v183_v2 }
   0x4   :  { %vm29_vm0 = vcmp.ge.s32.totalorder %v177_v3, 0  ;;  %v33_v8 = vsub.s32 2147483648, %v177_v3  ;;  %v41_v9 = vsub.s32 31, %v20_v4  ;;  %vm31_vm1 = vcmp.ge.s32.totalorder %v181_v5, 0 }
   0x5   :  { %v35_v10 = vsub.s32 2147483648, %v181_v5  ;;  %vm30_vm2 = vcmp.ge.s32.totalorder %v178_v6, 0  ;;  %v34_v11 = vsub.s32 2147483648, %v178_v6  ;;  %vm32_vm3 = vcmp.ge.s32.totalorder %v182_v7, 0 }
   0x6   :  { %v37_v12 = vsel %vm29_vm0, %v177_v3, %v33_v8  ;;  %v36_v13 = vsub.s32 2147483648, %v182_v7  ;;  %v15_v8 = vld [vmem:[%s225_s1] sm:$0xff] }
   0x7   :  { %v42_v14 = vor.u32 %v41_v9, %v37_v12  ;;  %v39_v15 = vsel %vm31_vm1, %v181_v5, %v35_v10  ;;  %v38_v16 = vsel %vm30_vm2, %v178_v6, %v34_v11  ;;  %v17_v10 = vld [vmem:[%s225_s1 + $0x10] sm:$0xff] }
   0x8   :  { %v44_v17 = vor.u32 %v41_v9, %v39_v15  ;;  %v43_v18 = vor.u32 %v41_v9, %v38_v16  ;;  %v40_v19 = vsel %vm32_vm3, %v182_v7, %v36_v13  ;;  %v187_v15 = vmov 0  }
   0x9   :  { %v47_v20 = vsel %vm46_vm4, %v42_v14, 2147483648  ;;  %v45_v21 = vor.u32 %v41_v9, %v40_v19  ;;  %v16_v9 = vld [vmem:[%s225_s1 + $0x8] sm:$0xff] }
   0xa   :  { %v49_v22 = vshra.s32 %v47_v20, 16  ;;  %v77_v23 = vsel %vm46_vm4, %v44_v17, 2147483648  ;;  %v62_v24 = vsel %vm46_vm4, %v43_v18, 2147483648  ;;  %v48_v33 = vand.u32 65535, %v47_v20  ;;  %v18_v17 = vld [vmem:[%s225_s1 + $0x18] sm:$0xff] }
   0xb   :  { %v79_v25 = vshra.s32 %v77_v23, 16  ;;  %v64_v26 = vshra.s32 %v62_v24, 16  ;;  %v92_v27 = vsel %vm46_vm4, %v45_v21, 2147483648  ;;  %v78_v34 = vand.u32 65535, %v77_v23 }
   0xc   :  { %v51_v28 = vcvt.s32.f32 %v49_v22  ;;  %v94_v29 = vshra.s32 %v92_v27, 16  ;;  %v50_v35 = vcvt.s32.f32 %v48_v33  ;;  %v63_v36 = vand.u32 65535, %v62_v24 }
   0xd   :  { %v81_v30 = vcvt.s32.f32 %v79_v25  ;;  %v66_v31 = vcvt.s32.f32 %v64_v26  ;;  %v80_v38 = vcvt.s32.f32 %v78_v34  ;;  %v93_v39 = vand.u32 65535, %v92_v27 }
   0xe   :  { %52 = vmax.xlane.f32.xlu0 %v51_v28  ;;  %v96_v32 = vcvt.s32.f32 %v94_v29  ;;  %v65_v42 = vcvt.s32.f32 %v63_v36 }
   0xf   :  { %82 = vmax.xlane.f32.xlu1 %v81_v30  ;;  %v95_v45 = vcvt.s32.f32 %v93_v39 }
  0x12   :  { %67 = vmax.xlane.f32.xlu0 %v66_v31 }
  0x13   :  { %97 = vmax.xlane.f32.xlu1 %v96_v32 }
  0x9b   :  { %v53_v37 = vpop.xlane.xlu0 %52 }
  0x9c   :  { %vm54_vm5 = vcmp.eq.f32.partialorder %v51_v28, %v53_v37  ;;  %v83_v40 = vpop.xlane.xlu1 %82  ;;  %v59_v49 = vcvt.f32.s32 %v53_v37 }
  0x9d   :  { %v55_v41 = vsel %vm54_vm5, %v50_v35, -inf  ;;  %vm84_vm6 = vcmp.eq.f32.partialorder %v81_v30, %v83_v40  ;;  %v89_v50 = vcvt.f32.s32 %v83_v40 }
  0x9e   :  { %56 = vmax.xlane.f32.xlu0 %v55_v41  ;;  %v85_v44 = vsel %vm84_vm6, %v80_v38, -inf  ;;  %v60_v52 = vshll.u32 %v59_v49, 16 }
  0x9f   :  { %v68_v43 = vpop.xlane.xlu0 %67  ;;  %v90_v56 = vshll.u32 %v89_v50, 16 }
  0xa0   :  { %vm69_vm7 = vcmp.eq.f32.partialorder %v66_v31, %v68_v43  ;;  %v98_v46 = vpop.xlane.xlu1 %97  ;;  %v74_v53 = vcvt.f32.s32 %v68_v43 }
  0xa1   :  { %v70_v47 = vsel %vm69_vm7, %v65_v42, -inf  ;;  %vm99_vm8 = vcmp.eq.f32.partialorder %v96_v32, %v98_v46  ;;  %v104_v57 = vcvt.f32.s32 %v98_v46 }
  0xa2   :  { %71 = vmax.xlane.f32.xlu1 %v70_v47  ;;  %86 = vmax.xlane.f32.xlu0 %v85_v44  ;;  %v100_v48 = vsel %vm99_vm8, %v95_v45, -inf  ;;  %v75_v60 = vshll.u32 %v74_v53, 16 }
  0xa3   :  { %v105_v2 = vshll.u32 %v104_v57, 16 }
  0xa6   :  { %101 = vmax.xlane.f32.xlu1 %v100_v48 }
 0x12b   :  { %v57_v51 = vpop.xlane.xlu0 %56 }
 0x12c   :  { %v58_v54 = vcvt.f32.s32 %v57_v51 }
 0x12e   :  { %v61_v55 = vadd.s32 %v60_v52, %v58_v54 }
 0x12f   :  { %v72_v58 = vpop.xlane.xlu1 %71  ;;  %v87_v59 = vpop.xlane.xlu0 %86 }
 0x130   :  { %v107_v61 = vand.u32 65535, %v61_v55  ;;  %v73_v62 = vcvt.f32.s32 %v72_v58  ;;  %v88_v63 = vcvt.f32.s32 %v87_v59 }
 0x132   :  { %v76_v0 = vadd.s32 %v75_v60, %v73_v62  ;;  %v91_v1 = vadd.s32 %v90_v56, %v88_v63  ;;  %v111_v4 = vsub.s32 31, %v107_v61 }
 0x133   :  { %v102_v3 = vpop.xlane.xlu1 %101 }
 0x134   :  { %v108_v5 = vand.u32 65535, %v76_v0  ;;  %v109_v6 = vand.u32 65535, %v91_v1  ;;  %v103_v7 = vcvt.f32.s32 %v102_v3  ;;  %vm126_vm9 = vcmp.eq.s32.totalorder %v111_v4, %v15_v8 }
 0x135   :  { %v138_v19 = vsel %vm126_vm9, 1, %v187_v15 }
 0x136   :  { %v112_v11 = vsub.s32 31, %v108_v5  ;;  %v113_v12 = vsub.s32 31, %v109_v6  ;;  %v106_v13 = vadd.s32 %v105_v2, %v103_v7  ;;  %v143_v23 = vsel %vm142_vm12, %v138_v19, 0 }
 0x138   :  { %vm127_vm10 = vcmp.eq.s32.totalorder %v112_v11, %v16_v9  ;;  %vm128_vm11 = vcmp.eq.s32.totalorder %v113_v12, %v17_v10  ;;  %v110_v14 = vand.u32 65535, %v106_v13 }
 0x139   :  { %v139_v16 = vsel %vm127_vm10, 1, %v187_v15  ;;  %v140_v20 = vsel %vm128_vm11, 1, %v187_v15 }
 0x13a   :  { %v114_v18 = vsub.s32 31, %v110_v14  ;;  %v144_v21 = vsel %vm142_vm12, %v139_v16, 0  ;;  %v145_v24 = vsel %vm142_vm12, %v140_v20, 0 }
 0x13b   :  { %v147_v26 = vadd.s32 %v144_v21, %v143_v23 }
 0x13c   :  { %vm129_vm13 = vcmp.eq.s32.totalorder %v114_v18, %v18_v17 }
 0x13d   :  { %v141_v22 = vsel %vm129_vm13, 1, %v187_v15 }
 0x13e   :  { %v146_v25 = vsel %vm142_vm12, %v141_v22, 0 }
 0x13f   :  { %v148_v27 = vadd.s32 %v146_v25, %v145_v24 }
 0x141   :  { %v149_v28 = vadd.s32 %v148_v27, %v147_v26 }
 0x143   :  { %v151_v29 = vshrl.u32 %v149_v28, 16  ;;  %v150_v30 = vand.u32 65535, %v149_v28 }
 0x145   :  { %v153_v31 = vcvt.s32.f32 %v151_v29  ;;  %v152_v32 = vcvt.s32.f32 %v150_v30 }
 0x147   :  { %156 = vadd.xlane.f32.xlu0 %v153_v31  ;;  %154 = vadd.xlane.f32.xlu1 %v152_v32 }
 0x1d4   :  { %v157_v33 = vpop.xlane.xlu0 %156  ;;  %v155_v34 = vpop.xlane.xlu1 %154 }
 0x1d5   :  { %v159_v35 = vcvt.f32.s32 %v157_v33  ;;  %v158_v37 = vcvt.f32.s32 %v155_v34 }
 0x1d7   :  { %v160_v36 = vshll.u32 %v159_v35, 16 }
 0x1d9   :  { %v161_v38 = vadd.s32 %v160_v36, %v158_v37 }
 0x1db   :  { %v162_v39 = vrot.slane %v161_v38, 4 }
 0x1dd   :  { %v163_v40 = vadd.s32 %v162_v39, %v161_v38 }
 0x1df   :  { %v164_v41 = vrot.slane %v163_v40, 2 }
 0x1e1   :  { %v165_v42 = vadd.s32 %v164_v41, %v163_v40 }
 0x1e3   :  { %v166_v43 = vrot.slane %v165_v42, 1 }
 0x1e5   :  { %v167_v44 = vadd.s32 %v166_v43, %v165_v42 }
 0x1e7   :  { %184 = vpush %v167_v44 }
 0x218   :  { %s185_s1 = spop %184 }
 0x219   :  { %v169_v45 = vstv %s185_s1 }
 0x21a   :  { %170 = vst [vmem:[%s226_s2] sm:$0xff] %v169_v45 }

</bundles_post_ra>
